<compile_context>
chip_gen: v7x
topology: tpu7x:2x2x1
jax: 0.10.0
libtpu: 0.0.40
codegen_flags: <defaults>
</compile_context>

<pallas_src>
import functools

import jax
import jax.numpy as jnp
import numpy as np
from jax import lax
from jax.experimental import pallas as pl
from jax.experimental.pallas import tpu as pltpu


_ACTIVATIONS = {
    "ReLU": lambda x: jnp.maximum(x, 0.0),
    "Tanh": jnp.tanh,
    "Sigmoid": jax.nn.sigmoid,
    # PyTorch nn.GELU default = exact erf.
    "GELU": lambda x: jax.nn.gelu(x, approximate=False),
    # EUP-friendly tanh approximation (v5e flips VALU-bound on exact erf);
    # opt-in only since it does not bit-match nn.GELU().
    "GELU_tanh": lambda x: jax.nn.gelu(x, approximate=True),
}


def _dw_block_kernel(x_ref, p_ref, out_ref, *, K, dilation, pad, L_valid, act):
    """Fused: dwconv1 -> trim -> act -> dwconv2 -> trim -> act -> + residual.

    x_ref, out_ref : (rows, Lp)       rows = flattened (batch, channel),
                                      Lp = L rounded up to a lane multiple.
    p_ref          : (rows, 2*K + 2)  packed [w1(K), b1(1), w2(K), b2(1)].

    The zero-padded + trimmed PyTorch conv is expressed as K lane rotations of
    the in-register tile (XLU) plus boundary masks; no VMEM halo scratch and
    no unaligned loads/stores.
    """
    rows, Lp = out_ref.shape

    # Hoisted once; masks are identical for both convolutions.
    t_idx = lax.broadcasted_iota(jnp.int32, (rows, Lp), 1)
    masks = {}
    for k in range(K):
        s = k * dilation - pad
        if s < 0:
            masks[k] = t_idx >= (-s)            # left zero-halo
        elif s > 0:
            masks[k] = t_idx < (L_valid - s)    # right zero-halo (true L, not Lp)

    p = p_ref[...].astype(jnp.float32)
    w1, b1 = p[:, 0:K], p[:, K:K + 1]
    w2, b2 = p[:, K + 1:2 * K + 1], p[:, 2 * K + 1:2 * K + 2]

    def dwconv(v, w, b):
        # out[r, t] = sum_k w[r, k] * x_zeropad[r, t + k*dilation] + b[r]
        # (exactly the first L_valid outputs of the padded conv, i.e. the
        #  post-trim result for both odd and even receptive fields).
        acc = None
        for k in range(K):                       # K static -> fully unrolled
            s = k * dilation - pad
            if s == 0:
                tap = v
            else:
                tap = pltpu.roll(v, (-s) % Lp, axis=1)   # XLU lane rotate
                tap = jnp.where(masks[k], tap, 0.0)
            term = w[:, k:k + 1] * tap
            acc = term if acc is None else acc + term
        return acc + b

    y = act(dwconv(x_ref[...].astype(jnp.float32), w1, b1))
    y = act(dwconv(y, w2, b2))
    # Re-read the (already VMEM-resident) input block for the residual:
    # keeps x's live range short instead of holding a full f32 tile live
    # across both convolutions (less spill pressure when tiles are large).
    out_ref[...] = (y + x_ref[...].astype(jnp.float32)).astype(out_ref.dtype)


def depthwise_conv_block(x, w1, b1, w2, b2, *, kernel_size, dilation, activation,
                         vmem_budget_bytes=20 * 1024 * 1024, target_grid_steps=4):
    """x: (N, C, L).  w*: (C, 1, K) or (C, K).  b*: (C,)."""
    N, C, L = x.shape
    K = kernel_size
    rf = (K - 1) * dilation + 1
    pad = rf // 2
    act = _ACTIVATIONS[activation]

    R = N * C
    # Lane-dense output: pad L to the next multiple of 128 so stores are full
    # `vst` (not masked vst.msk); the kernel masks with the true L.
    Lp = ((L + 127) // 128) * 128
    xr = x.reshape(R, L)
    if Lp != L:
        xr = jnp.pad(xr, ((0, 0), (0, Lp - L)))

    # Pack all per-channel parameters into one (R, 2K+2) table -> a single
    # small DMA per grid step instead of four narrow ones.
    ptab = jnp.concatenate(
        [w1.reshape(C, K), b1.reshape(C, 1),
         w2.reshape(C, K), b2.reshape(C, 1)], axis=1).astype(jnp.float32)
    params = jnp.broadcast_to(ptab[None], (N, C, 2 * K + 2)).reshape(R, 2 * K + 2)

    # Row tile from an explicit VMEM budget (double-buffered in/out plus live
    # f32 temps), and forced small enough that the grid has at least
    # `target_grid_steps` steps whenever R allows (pipeline overlap + both
    # TensorCores via megacore sharding on v7x).
    itemsize = jnp.dtype(x.dtype).itemsize

    def _round_up(a, m):
        return ((a + m - 1) // m) * m

    bytes_per_row = 2 * 2 * Lp * itemsize + 3 * Lp * 4
    if R <= 8:
        rows_blk = R                              # full-extent block (legal)
    else:
        rows_from_vmem = max(8, int(vmem_budget_bytes // bytes_per_row) // 8 * 8)
        rows_for_steps = max(8, _round_up(pl.cdiv(R, target_grid_steps), 8))
        rows_blk = int(min(rows_from_vmem, rows_for_steps, _round_up(R, 8)))
    grid = (pl.cdiv(R, rows_blk),)

    est_vmem = 2 * rows_blk * Lp * itemsize * 2 + 2 * rows_blk * (2 * K + 2) * 4
    vmem_limit = int(min(max(2 * est_vmem, 16 * 1024 * 1024), 48 * 1024 * 1024))

    # Advisory hint: this kernel is HBM-BW + VPU/XLU bound; no MXU work.
    transcendental_acts = ("Tanh", "Sigmoid", "GELU", "GELU_tanh")
    cost = pl.CostEstimate(
        flops=4 * K * R * Lp,
        transcendentals=(2 * R * Lp if activation in transcendental_acts else 0),
        bytes_accessed=2 * R * Lp * itemsize + R * (2 * K + 2) * 4)

    kernel = functools.partial(
        _dw_block_kernel, K=K, dilation=dilation, pad=pad, L_valid=L, act=act)

    out = pl.pallas_call(
        kernel,
        out_shape=jax.ShapeDtypeStruct((R, Lp), x.dtype),
        grid=grid,
        in_specs=[
            pl.BlockSpec((rows_blk, Lp), lambda i: (i, 0)),
            pl.BlockSpec((rows_blk, 2 * K + 2), lambda i: (i, 0)),
        ],
        out_specs=pl.BlockSpec((rows_blk, Lp), lambda i: (i, 0)),
        compiler_params=pltpu.CompilerParams(
            dimension_semantics=("parallel",),
            vmem_limit_bytes=vmem_limit),
        cost_estimate=cost,
    )(xr, params)

    if Lp != L:
        out = out[:, :L]
    return out.reshape(N, C, L)


def ref_forward(x, w1, b1, w2, b2, *, kernel_size, dilation, activation):
    """Pure-JAX reference matching PyTorch depthwise Conv1d semantics exactly."""
    N, C, L = x.shape
    rf = (kernel_size - 1) * dilation + 1
    pad = rf // 2
    remove = 1 if rf % 2 == 0 else 0
    act = _ACTIVATIONS[activation]

    def conv(inp, w, b):
        y = lax.conv_general_dilated(
            inp, w.reshape(C, 1, kernel_size),
            window_strides=(1,), padding=[(pad, pad)],
            rhs_dilation=(dilation,), feature_group_count=C,
            dimension_numbers=("NCH", "OIH", "NCH"))
        return y + b.reshape(1, C, 1)

    y = conv(x, w1, b1)
    if remove:
        y = y[:, :, :-remove]
    y = act(y)
    y = conv(y, w2, b2)
    if remove:
        y = y[:, :, :-remove]
    y = act(y)
    return y + x


if __name__ == "__main__":
    key = jax.random.PRNGKey(0)

    def make_params(k, C, K):
        kw1, kb1, kw2, kb2 = jax.random.split(k, 4)
        bound = 1.0 / np.sqrt(K)   # PyTorch Conv1d: fan_in = (C/groups)*K = K
        w1 = jax.random.uniform(kw1, (C, 1, K), jnp.float32, -bound, bound)
        b1 = jax.random.uniform(kb1, (C,), jnp.float32, -bound, bound)
        w2 = jax.random.uniform(kw2, (C, 1, K), jnp.float32, -bound, bound)
        b2 = jax.random.uniform(kb2, (C,), jnp.float32, -bound, bound)
        return w1, b1, w2, b2

    configs = [
        # (N, C, L, kernel_size, dilation, activation)
        (2, 8, 128, 3, 2, "ReLU"),   # odd receptive field, lane-dense L
        (3, 8, 96, 4, 1, "Tanh"),    # even receptive field (trim), L padded->128
    ]
    for (N, C, L, K, dil, act_name) in configs:
        kx, kp, key = jax.random.split(key, 3)
        x = jax.random.normal(kx, (N, C, L), dtype=jnp.float32)
        w1, b1, w2, b2 = make_params(kp, C, K)

        out = depthwise_conv_block(
            x, w1, b1, w2, b2, kernel_size=K, dilation=dil, activation=act_name)
        out = jax.block_until_ready(out)

        ref = ref_forward(
            x, w1, b1, w2, b2, kernel_size=K, dilation=dil, activation=act_name)
        ref = jax.block_until_ready(ref)

        np.testing.assert_allclose(np.asarray(out), np.asarray(ref),
                                   rtol=1e-5, atol=1e-5)

    print("KERNEL_OK")
</pallas_src>

<mosaic_0001>
module attributes {stable_mosaic.version = 11 : i64} {
  func.func @_dw_block_kernel(%arg0: i32, %arg1: memref<8x128xf32, #tpu.memory_space<vmem>>, %arg2: memref<8x8xf32, #tpu.memory_space<vmem>>, %arg3: memref<8x128xf32, #tpu.memory_space<vmem>>) attributes {dimension_semantics = [#tpu.dimension_semantics<parallel>], iteration_bounds = array<i64: 2>, scalar_prefetch = 0 : i64, scratch_operands = 0 : i64, tpu.core_type = #tpu.core_type<tc>, window_params = [{transform_indices = @transform_0, window_bounds = array<i64: 8, 128>}, {transform_indices = @transform_1, window_bounds = array<i64: 8, 8>}, {transform_indices = @transform_2, window_bounds = array<i64: 8, 128>}]} {
    %0 = tpu.iota {dimensions = array<i32: 1>} : vector<8x128xi32>
    %c2_i32 = arith.constant 2 : i32
    %1 = vector.broadcast %c2_i32 : i32 to vector<8x128xi32>
    %2 = arith.cmpi sge, %0, %1 : vector<8x128xi32>
    %c126_i32 = arith.constant 126 : i32
    %3 = vector.broadcast %c126_i32 : i32 to vector<8x128xi32>
    %4 = arith.cmpi slt, %0, %3 : vector<8x128xi32>
    %c0 = arith.constant 0 : index
    %c0_0 = arith.constant 0 : index
    %5 = vector.load %arg2[%c0, %c0_0] : memref<8x8xf32, #tpu.memory_space<vmem>>, vector<8x8xf32>
    %6 = vector.extract_strided_slice %5 {offsets = [0, 0], sizes = [8, 3], strides = [1, 1]} : vector<8x8xf32> to vector<8x3xf32>
    %7 = vector.extract_strided_slice %5 {offsets = [0, 3], sizes = [8, 1], strides = [1, 1]} : vector<8x8xf32> to vector<8x1xf32>
    %8 = vector.extract_strided_slice %5 {offsets = [0, 4], sizes = [8, 3], strides = [1, 1]} : vector<8x8xf32> to vector<8x3xf32>
    %9 = vector.extract_strided_slice %5 {offsets = [0, 7], sizes = [8, 1], strides = [1, 1]} : vector<8x8xf32> to vector<8x1xf32>
    %c0_1 = arith.constant 0 : index
    %c0_2 = arith.constant 0 : index
    %10 = vector.load %arg1[%c0_1, %c0_2] : memref<8x128xf32, #tpu.memory_space<vmem>>, vector<8x128xf32>
    %c2_i32_3 = arith.constant 2 : i32
    %11 = tpu.dynamic_rotate %10 by %c2_i32_3 dim 1 : vector<8x128xf32>, i32 -> vector<8x128xf32>
    %cst = arith.constant 0.000000e+00 : f32
    %12 = vector.broadcast %cst : f32 to vector<8x128xf32>
    %13 = arith.select %2, %11, %12 : vector<8x128xi1>, vector<8x128xf32>
    %14 = vector.extract_strided_slice %6 {offsets = [0, 0], sizes = [8, 1], strides = [1, 1]} : vector<8x3xf32> to vector<8x1xf32>
    %15 = vector.broadcast %14 : vector<8x1xf32> to vector<8x128xf32>
    %16 = arith.mulf %15, %13 : vector<8x128xf32>
    %17 = vector.extract_strided_slice %6 {offsets = [0, 1], sizes = [8, 1], strides = [1, 1]} : vector<8x3xf32> to vector<8x1xf32>
    %18 = vector.broadcast %17 : vector<8x1xf32> to vector<8x128xf32>
    %19 = arith.mulf %18, %10 : vector<8x128xf32>
    %20 = arith.addf %16, %19 : vector<8x128xf32>
    %c126_i32_4 = arith.constant 126 : i32
    %21 = tpu.dynamic_rotate %10 by %c126_i32_4 dim 1 : vector<8x128xf32>, i32 -> vector<8x128xf32>
    %cst_5 = arith.constant 0.000000e+00 : f32
    %22 = vector.broadcast %cst_5 : f32 to vector<8x128xf32>
    %23 = arith.select %4, %21, %22 : vector<8x128xi1>, vector<8x128xf32>
    %24 = vector.extract_strided_slice %6 {offsets = [0, 2], sizes = [8, 1], strides = [1, 1]} : vector<8x3xf32> to vector<8x1xf32>
    %25 = vector.broadcast %24 : vector<8x1xf32> to vector<8x128xf32>
    %26 = arith.mulf %25, %23 : vector<8x128xf32>
    %27 = arith.addf %20, %26 : vector<8x128xf32>
    %28 = vector.broadcast %7 : vector<8x1xf32> to vector<8x128xf32>
    %29 = arith.addf %27, %28 : vector<8x128xf32>
    %cst_6 = arith.constant 0.000000e+00 : f32
    %30 = vector.broadcast %cst_6 : f32 to vector<8x128xf32>
    %31 = arith.maximumf %29, %30 : vector<8x128xf32>
    %c2_i32_7 = arith.constant 2 : i32
    %32 = tpu.dynamic_rotate %31 by %c2_i32_7 dim 1 : vector<8x128xf32>, i32 -> vector<8x128xf32>
    %cst_8 = arith.constant 0.000000e+00 : f32
    %33 = vector.broadcast %cst_8 : f32 to vector<8x128xf32>
    %34 = arith.select %2, %32, %33 : vector<8x128xi1>, vector<8x128xf32>
    %35 = vector.extract_strided_slice %8 {offsets = [0, 0], sizes = [8, 1], strides = [1, 1]} : vector<8x3xf32> to vector<8x1xf32>
    %36 = vector.broadcast %35 : vector<8x1xf32> to vector<8x128xf32>
    %37 = arith.mulf %36, %34 : vector<8x128xf32>
    %38 = vector.extract_strided_slice %8 {offsets = [0, 1], sizes = [8, 1], strides = [1, 1]} : vector<8x3xf32> to vector<8x1xf32>
    %39 = vector.broadcast %38 : vector<8x1xf32> to vector<8x128xf32>
    %40 = arith.mulf %39, %31 : vector<8x128xf32>
    %41 = arith.addf %37, %40 : vector<8x128xf32>
    %c126_i32_9 = arith.constant 126 : i32
    %42 = tpu.dynamic_rotate %31 by %c126_i32_9 dim 1 : vector<8x128xf32>, i32 -> vector<8x128xf32>
    %cst_10 = arith.constant 0.000000e+00 : f32
    %43 = vector.broadcast %cst_10 : f32 to vector<8x128xf32>
    %44 = arith.select %4, %42, %43 : vector<8x128xi1>, vector<8x128xf32>
    %45 = vector.extract_strided_slice %8 {offsets = [0, 2], sizes = [8, 1], strides = [1, 1]} : vector<8x3xf32> to vector<8x1xf32>
    %46 = vector.broadcast %45 : vector<8x1xf32> to vector<8x128xf32>
    %47 = arith.mulf %46, %44 : vector<8x128xf32>
    %48 = arith.addf %41, %47 : vector<8x128xf32>
    %49 = vector.broadcast %9 : vector<8x1xf32> to vector<8x128xf32>
    %50 = arith.addf %48, %49 : vector<8x128xf32>
    %cst_11 = arith.constant 0.000000e+00 : f32
    %51 = vector.broadcast %cst_11 : f32 to vector<8x128xf32>
    %52 = arith.maximumf %50, %51 : vector<8x128xf32>
    %c0_12 = arith.constant 0 : index
    %c0_13 = arith.constant 0 : index
    %53 = vector.load %arg1[%c0_12, %c0_13] : memref<8x128xf32, #tpu.memory_space<vmem>>, vector<8x128xf32>
    %54 = arith.addf %52, %53 : vector<8x128xf32>
    %c0_14 = arith.constant 0 : index
    %c0_15 = arith.constant 0 : index
    %55 = vector.load %arg3[%c0_14, %c0_15] : memref<8x128xf32, #tpu.memory_space<vmem>>, vector<8x128xf32>
    tpu.vector_store %arg3[%c0_14, %c0_15], %54 {strides = array<i32>} : memref<8x128xf32, #tpu.memory_space<vmem>>, vector<8x128xf32>,
    return
  }
  func.func @transform_0(%arg0: i32) -> (i32, i32) {
    %c0_i32 = arith.constant 0 : i32
    %c0_i32_0 = arith.constant 0 : i32
    return %arg0, %c0_i32 : i32, i32
  }
  func.func @transform_1(%arg0: i32) -> (i32, i32) {
    %c0_i32 = arith.constant 0 : i32
    %c0_i32_0 = arith.constant 0 : i32
    return %arg0, %c0_i32 : i32, i32
  }
  func.func @transform_2(%arg0: i32) -> (i32, i32) {
    %c0_i32 = arith.constant 0 : i32
    %c0_i32_0 = arith.constant 0 : i32
    return %arg0, %c0_i32 : i32, i32
  }
}

</mosaic_0001>

<bundles_post_ra>
// kernel: tpu_custom_call.1
= control target key start
LH: loop header
LB: loop body
LE: loop exit
PB: predicated region body
PF: predicated region fallthrough
CT: control target
= control target key end

     0   :  { %7 = vsyncpa [#allocation3], 0  ;;  %s583_s0 = inlined_call_operand.vmem [shape: f32[16,128], index: 0, kind: input, shape index: {}]   ;;  %s584_s1 = inlined_call_operand.vmem [shape: f32[16,8], index: 1, kind: input, shape index: {}]   ;;  %s585_s2 = inlined_call_operand.hbm [shape: f32[16,128], index: 2, kind: output, shape index: {}]  }
   0x1   :  { %9 = vsyncpa [#allocation3 + $0x1], 0  ;;  %s466_s9 = smov 0   ;;  %s468_s10 = smov 0  }
   0x2   :  { %s470_s11 = smov 0   ;;  %s472_s12 = smov 0  }
   0x3 LB: > { %s487_s13 = sadd.s32 4294967295, %s438_s12   ;;  %s308_s14 = sadd.s32 4294967294, %s438_s12   ;;  %s438_s12 = sphi %s472_s12, %s591_s12   ;;  %s434_s11 = sphi %s470_s11, %s590_s11   ;;  %s430_s10 = sphi %s468_s10, %s589_s10   ;;  %s426_s9 = sphi %s466_s9, %s588_s9  }
   0x4   : > { %s491_s15 = sadd.s32 1, %s438_s12   ;;  %s74_s16 = sadd.s32 1, %s434_s11 }
   0x5   : > { %s71_s17 = ssub.s32 %s438_s12, %s491_s15  ;;  %p84_p0 = scmp.ne.s32.totalorder %s434_s11, %s430_s10 }
   0x6   : > { %p72_p1 = scmp.eq.s32.totalorder %s71_s17, 0  ;;  %p85_p2 = scmp.eq.s32.totalorder %s487_s13, 1 }
   0x7   : > { %p90_p3 = scmp.ne.s32.totalorder %s430_s10, %s426_s9  ;;  %p91_p4 = scmp.eq.s32.totalorder %s308_s14, 1 }
   0x8   : > { %s502_s18 = scalar_select %p72_p1, %s434_s11, %s74_s16  }
   0x9   : > { %p504_p5 = por %p85_p2, %p84_p0  ;;  %p508_p6 = por %p91_p4, %p90_p3 }
   0xa   : > { %p311_p7 = scmp.ge.s32.totalorder %s438_s12, 1  ;;  %p123_p8 = scmp.lt.s32.totalorder %s438_s12, 3 }
   0xc   : > { %p124_p9 = pnand %p311_p7, %p123_p8 }
   0xd   : > { %p148_p10 = scmp.lt.s32.totalorder (!%p124_p9), %s487_s13, 1  ;;  %v440_v0 = vmov (!%p124_p9), 2   ;;  %v441_v1 = vmov (!%p124_p9), 0   ;;  %v442_v4 = vmov (!%p124_p9), 1   ;;  %s443_s29 = smov (!%p124_p9), 2   ;;  %v444_v5 = vmov (!%p124_p9), 3  }
   0xe   : > { %127 = sbr.rel (%p124_p9) target bundleno = 316 (0x13c), region = 28  ;;  %370 = vset.pattern.permute.xlu1 (!%p124_p9), %v440_v0  ;;  %368 = vset.pattern.permute.xlu0 (!%p124_p9), %v441_v1  ;;  %s445_s30 = smov (!%p124_p9), 126   ;;  %v446_v6 = vmov (!%p124_p9), 5   ;;  %v447_v7 = vmov (!%p124_p9), 4   ;;  %v448_v8 = vmov (!%p124_p9), 6   ;;  %v449_v9 = vmov (!%p124_p9), 7  }
   0xf   : > { %v156_v10 = vlaneseq (!%p124_p9)  ;;  %s145_s3 = sand.u32 (!%p124_p9), 1, %s430_s10   ;;  %s316_s5 = sshll.u32 (!%p124_p9), %s487_s13, 7 }
  0x10   : > { %s312_s4 = sshll.u32 (!%p124_p9), %s145_s3, 3  ;;  %s541_s16 = scalar_lea.hbm (!%p124_p9), %s585_s2, %s316_s5 }
  0x11   : > { %v157_v11 = vand.u32 (!%p124_p9), 127, %v156_v10  ;;  %s147_s6 = scalar_lea.vmem (!%p124_p9), [#allocation2], %s312_s4  ;;  %s224_s17 = scalar_lea.sflag (!%p124_p9), [#allocation3], %s145_s3 }
  0x12   : > { %s237_s7 = sshll.u32 (!%p124_p9), %s147_s6, 4  ;;  %s543_s7 = int_to_ptr.vmem [resolvable:$true] %s237_s7 }
  0x13   : > { %vm158_vm0 = vcmp.ge.s32.totalorder (!%p124_p9), %v157_v11, 2  ;;  %vm159_vm1 = vcmp.lt.s32.totalorder (!%p124_p9), %v157_v11, 126 }
  0x15   : > { %s149_s21 = scalar_select %p148_p10, %s487_s13, 1 }
  0x16   : > { %s450_s13 = smov [#allocation2]  }
  0x17   : > { %s313_s22 = sshll.u32 %s149_s21, 3  ;;  %s376_s21 = scalar_lea.vmem %s543_s7, 128 }
  0x18   : > { %s155_s25 = scalar_lea.vmem %s584_s1, %s313_s22  ;;  %s151_s28 = scalar_lea.vmem %s583_s0, %s313_s22 }
  0x19   : > { %v160_v2 = vld [vmem:[%s155_s25] sm:$0xff]  ;;  %p377_p11 = scmp.ne.s32.totalorder %s543_s7, %s376_s21  ;;  %s380_s22 = sshll.u32 %s450_s13, 4  ;;  %s381_s22 = int_to_ptr.vmem [resolvable:$false] %s380_s22 }
  0x1a   : > { %181 = vperm.xlu1 %370, %v160_v2   ;;  %167 = vperm.xlu0 %368, %v160_v2   ;;  %v522_v3 = vld [vmem:[%s151_s28] sm:$0xff]  ;;  %s382_s23 = scalar_lea.vmem %s381_s22, 256  ;;  %p383_p0 = scmp.lt.s32.totalorder %s543_s7, %s381_s22 }
  0x1b   : > { %p378_p12 = pnand %p377_p11, %p504_p5  ;;  %p384_p1 = scmp.lt.s32.totalorder %s382_s23, %s376_s21 }
  0x1d   : > { %p379_p13 = pneg %p378_p12  ;;  %p385_p2 = por %p384_p1, %p383_p0 }
  0x1e   : > { %369 = vset.pattern.permute.xlu0 %v442_v4  ;;  %162 = vrot.lane.b32.xlu1 %v522_v3, %s443_s29 }
  0x1f   : > { %172 = vperm.xlu0 %369, %v160_v2   ;;  %371 = vset.pattern.permute.xlu1 %v444_v5  ;;  %p386_p3 = pnand %p385_p2, %p379_p13 }
  0x22   : > { %187 = vperm.xlu1 %371, %v160_v2  }
  0x23   : > { %177 = vrot.lane.b32.xlu0 %v522_v3, %s445_s30 }
  0x24   : > { %373 = vset.pattern.permute.xlu0 %v446_v6 }
  0x26   : > { %372 = vset.pattern.permute.xlu1 %v447_v7 }
  0x27   : > { %201 = vperm.xlu0 %373, %v160_v2   ;;  %196 = vperm.xlu1 %372, %v160_v2  }
  0x2b   : > { %374 = vset.pattern.permute.xlu1 %v448_v8  ;;  %375 = vset.pattern.permute.xlu0 %v449_v9 }
  0x2c   : > { %210 = vperm.xlu1 %374, %v160_v2   ;;  %216 = vperm.xlu0 %375, %v160_v2  }
  0x99   : > { %v182_v12 = vpop.permute.xlu1 %181  ;;  %v168_v13 = vpop.permute.xlu0 %167 }
  0x9d   : > { %v163_v14 = vpop.permute.xlu1 %162 }
  0x9e   : > { %v164_v15 = vsel %vm158_vm0, %v163_v14, 0.0  ;;  %v173_v16 = vpop.permute.xlu0 %172 }
  0x9f   : > { %v170_v17 = vmul.f32 %v168_v13, %v164_v15  ;;  %v175_v18 = vmul.f32 %v173_v16, %v522_v3 }
  0xa1   : > { %v176_v21 = vadd.f32 %v175_v18, %v170_v17  ;;  %v188_v23 = vpop.permute.xlu1 %187 }
  0xa2   : > { %v178_v19 = vpop.permute.xlu0 %177 }
  0xa3   : > { %v179_v20 = vsel %vm159_vm1, %v178_v19, 0.0 }
  0xa4   : > { %v184_v22 = vmul.f32 %v182_v12, %v179_v20 }
  0xa6   : > { %v185_v24 = vadd.f32 %v184_v22, %v176_v21  ;;  %v197_v27 = vpop.permute.xlu1 %196  ;;  %v202_v30 = vpop.permute.xlu0 %201 }
  0xa8   : > { %v190_v25 = vadd.f32 %v188_v23, %v185_v24 }
  0xaa   : > { %v191_v26 = vmax.f32 %v190_v25, 0.0 }
  0xab   : > { %v211_v28 = vpop.permute.xlu1 %210  ;;  %v217_v38 = vpop.permute.xlu0 %216 }
  0xac   : > { %192 = vrot.lane.b32.xlu1 %v191_v26, %s443_s29  ;;  %v204_v33 = vmul.f32 %v202_v30, %v191_v26 }
  0xb0   : > { %206 = vrot.lane.b32.xlu1 %v191_v26, %s445_s30 }
 0x11e   : > { %v193_v29 = vpop.permute.xlu1 %192 }
 0x11f   : > { %v194_v31 = vsel %vm158_vm0, %v193_v29, 0.0 }
 0x120   : > { %v199_v32 = vmul.f32 %v197_v27, %v194_v31 }
 0x122   : > { %v207_v34 = vpop.permute.xlu1 %206  ;;  %v205_v36 = vadd.f32 %v204_v33, %v199_v32 }
 0x123   : > { %v208_v35 = vsel %vm159_vm1, %v207_v34, 0.0 }
 0x124   : > { %v213_v37 = vmul.f32 %v211_v28, %v208_v35 }
 0x126   : > { %v214_v39 = vadd.f32 %v213_v37, %v205_v36 }
 0x128   : > { %v219_v40 = vadd.f32 %v217_v38, %v214_v39 }
 0x12a   : > { %v220_v41 = vmax.f32 %v219_v40, 0.0 }
 0x12c   : > { %v221_v42 = vadd.f32 %v220_v41, %v522_v3 }
 0x12e   : > { %222 = vst [vmem:[%s147_s6] sm:$0xff] %v221_v42 }
 0x12f   : > { %389 = shalt.err (!%p386_p3)
}
 0x130   : > { %s390_s24 = scalar_lea.hbm %s541_s16, 128  ;;  %s394_s27 = scalar_lea.hbm %s585_s2, 256 }
 0x131   : > { %p391_p4 = scmp.ne.s32.totalorder %s541_s16, %s390_s24  ;;  %p395_p9 = scmp.lt.u32.totalorder %s541_s16, %s585_s2 }
 0x132   : > { %p396_p10 = scmp.lt.u32.totalorder %s394_s27, %s390_s24  ;;  %p398_p12 = scmp.lt.u32.totalorder %s390_s24, %s541_s16 }
 0x133   : > { %p392_p7 = pnand %p391_p4, %p504_p5 }
 0x134   : > { %p397_p11 = por %p396_p10, %p395_p9 }
 0x135   : > { %p393_p8 = pneg %p392_p7 }
 0x136   : > { %p399_p13 = por %p398_p12, %p397_p11 }
 0x138   : > { %p400_p0 = pnand %p399_p13, %p393_p8 }
 0x13a   : > { %403 = shalt.err (!%p400_p0)
}
 0x13b   : > { %319 = dma.vmem_to_hbm [thread:$0]  (%p504_p5), %s543_s7, 128, %s541_s16, %s224_s17  }
 0x13c PF: > { %p325_p1 = scmp.ge.s32.totalorder %s438_s12, 2  ;;  %s249_s30 = sand.u32 1, %s426_s9  }
 0x13d   : > { %s250_s3 = scalar_lea.sflag [#allocation3], %s249_s30 }
 0x13e   : > { %p322_p2 = pnand %p325_p1, %p508_p6 }
 0x140   : > { %421 = dma.done.wait (!%p322_p2), %s250_s3, 128  }
 0x141   : > { %423 = vsyncadd (!%p322_p2), %s250_s3, 4294967168  ;;  %p12_p3 = scmp.ge.s32.totalorder %s491_s15, 4   ;;  %s588_s9 = smov %s430_s10 }
 0x142   : > { %s589_s10 = smov %s434_s11  ;;  %s590_s11 = smov %s502_s18 }
 0x143   : > { %s591_s12 = smov %s491_s15  ;;  %14 = sbr.rel (!%p12_p3) target bundleno = 3 (0x3), region = 66 }
 0x14a   :  { %255 = vsyncpa [#allocation3], 1 }
 0x14b   :  { %257 = vsyncpa [#allocation3 + $0x1], 1 }

</bundles_post_ra>
